<compile_context>
chip_gen: v6e
topology: v6e:2x2x1
jax: 0.10.0
libtpu: 0.0.40
codegen_flags: <defaults>
</compile_context>

<pallas_src>
import functools

import jax
import jax.numpy as jnp
from jax import lax
from jax.experimental import pallas as pl
from jax.experimental.pallas import tpu as pltpu


def _d3_pos_enc_kernel(x_ref, w_ref, o_ref, *, n_valid, block_rows):
    # x_ref: (block_rows, 3)   coordinates for this row tile (tail may be junk)
    # w_ref: (3, D)            per-channel scale rows, W[c, 3s+c'] = scales[s]*d(c,c')
    # o_ref: (block_rows, D)   output tile
    i = pl.program_id(0)
    rows = i * block_rows + lax.broadcasted_iota(jnp.int32, (block_rows, 1), 0)
    # Zero out appended padding rows (and any out-of-bounds junk in the tail tile).
    x = jnp.where(rows < n_valid, x_ref[...], jnp.zeros((), x_ref.dtype))  # (TN, 3)

    # VPU broadcast expansion: out[:, 3s+c] = x[:, c] * scales[s].
    out = (x[:, 0:1] * w_ref[0:1, :]
           + x[:, 1:2] * w_ref[1:2, :]
           + x[:, 2:3] * w_ref[2:3, :])                                    # (TN, D)
    o_ref[...] = out.astype(o_ref.dtype)


def _round_up(n, m):
    return ((n + m - 1) // m) * m


def d3_positional_encoder(x, d_model=48, n_padding=0, *,
                          block_rows=None, out_dtype=None, use_pallas=None):
    """JAX/Pallas equivalent of D3PositionalEncoder.forward(x, n_padding)."""
    N, C = x.shape
    assert C == 3, "expected x.shape[1] == 3"
    n_seg = d_model // 3
    D = 3 * n_seg
    Npad = N + n_padding
    out_dtype = x.dtype if out_dtype is None else out_dtype

    # scales = torch.linspace(-1, 1, nSeg)
    scales = jnp.linspace(-1.0, 1.0, n_seg, dtype=x.dtype)

    if use_pallas is None:
        # Tiny problems are overhead-dominated; let XLA fuse the broadcast.
        use_pallas = Npad * D >= (1 << 16)

    if not use_pallas:
        xs = (x[:, None, :] * scales[None, :, None]).reshape(N, D).astype(out_dtype)
        if n_padding > 0:
            xs = jnp.pad(xs, ((0, n_padding), (0, 0)))
        return xs

    # W[c, 3*s + c'] = scales[s] if c == c' else 0   (3 rows of per-channel scales)
    eye3 = jnp.eye(3, dtype=x.dtype)
    W = (eye3[:, None, :] * scales[None, :, None]).reshape(3, D)

    if block_rows is None:
        block_rows = min(1024, _round_up(Npad, 8))
    grid = pl.cdiv(Npad, block_rows)
    # Clamp target for the input index_map: trailing tiles that are entirely
    # padding must not index x out of bounds (their rows are masked anyway).
    in_clamp = max(pl.cdiv(N, block_rows) - 1, 0)

    kernel = functools.partial(_d3_pos_enc_kernel, n_valid=N, block_rows=block_rows)

    out = pl.pallas_call(
        kernel,
        out_shape=jax.ShapeDtypeStruct((Npad, D), out_dtype),
        grid=(grid,),
        in_specs=[
            pl.BlockSpec((block_rows, 3), lambda i: (jnp.minimum(i, in_clamp), 0)),
            pl.BlockSpec((3, D), lambda i: (0, 0)),
        ],
        out_specs=pl.BlockSpec((block_rows, D), lambda i: (i, 0)),
        compiler_params=pltpu.CompilerParams(
            dimension_semantics=("parallel",),
        ),
    )(x, W)
    return out


def _reference(x, d_model=48, n_padding=0):
    # Pure-JAX mirror of the PyTorch forward, for verification only.
    n_seg = d_model // 3
    scales = jnp.linspace(-1.0, 1.0, n_seg, dtype=x.dtype)
    xs = jnp.concatenate([x * sc for sc in scales], axis=1)
    if n_padding > 0:
        xs = jnp.pad(xs, ((0, n_padding), (0, 0)))
    return xs


if __name__ == "__main__":
    d_model = 48
    key = jax.random.PRNGKey(0)
    k_small, k_big = jax.random.split(key)

    # Small case (8 points, 2 zero pad rows); force the Pallas path so the
    # kernel itself is exercised even at this tiny size.
    x_small = jax.random.normal(k_small, (8, 3), dtype=jnp.float32)
    out_small = d3_positional_encoder(x_small, d_model=d_model, n_padding=2,
                                      use_pallas=True)
    out_small = jax.block_until_ready(out_small)
    ref_small = _reference(x_small, d_model=d_model, n_padding=2)
    assert out_small.shape == (8 + 2, 3 * (d_model // 3)), out_small.shape
    assert jnp.allclose(out_small, ref_small, atol=1e-6, rtol=1e-6), "small mismatch"

    # Multi-tile case: exercises the tiled parallel grid, the clamped input
    # index_map and a trailing tile that is entirely padding rows.
    x_big = jax.random.normal(k_big, (1024, 3), dtype=jnp.float32)
    out_big = d3_positional_encoder(x_big, d_model=d_model, n_padding=3,
                                    block_rows=256, use_pallas=True)
    out_big = jax.block_until_ready(out_big)
    ref_big = _reference(x_big, d_model=d_model, n_padding=3)
    assert out_big.shape == ref_big.shape, out_big.shape
    assert jnp.allclose(out_big, ref_big, atol=1e-6, rtol=1e-6), "big mismatch"

    print("KERNEL_OK")
</pallas_src>

<mosaic_0001>
module attributes {stable_mosaic.version = 11 : i64} {
  func.func @_d3_pos_enc_kernel(%arg0: i32, %arg1: memref<16x3xf32, #tpu.memory_space<vmem>>, %arg2: memref<3x48xf32, #tpu.memory_space<vmem>>, %arg3: memref<16x48xf32, #tpu.memory_space<vmem>>) attributes {dimension_semantics = [#tpu.dimension_semantics<parallel>], iteration_bounds = array<i64: 1>, scalar_prefetch = 0 : i64, scratch_operands = 0 : i64, tpu.core_type = #tpu.core_type<tc>, window_params = [{transform_indices = @transform_0, window_bounds = array<i64: 16, 3>}, {pipeline_mode = #tpu.pipeline_mode<synchronous>, transform_indices = @transform_1, window_bounds = array<i64: 3, 48>}, {transform_indices = @transform_2, window_bounds = array<i64: 16, 48>}]} {
    %c16_i32 = arith.constant 16 : i32
    %0 = arith.muli %arg0, %c16_i32 : i32
    %1 = tpu.iota {dimensions = array<i32: 0>} : vector<16x1xi32>
    %2 = vector.broadcast %0 : i32 to vector<16x1xi32>
    %3 = arith.addi %2, %1 : vector<16x1xi32>
    %c8_i32 = arith.constant 8 : i32
    %4 = vector.broadcast %c8_i32 : i32 to vector<16x1xi32>
    %5 = arith.cmpi slt, %3, %4 : vector<16x1xi32>
    %c0 = arith.constant 0 : index
    %c0_0 = arith.constant 0 : index
    %6 = vector.load %arg1[%c0, %c0_0] : memref<16x3xf32, #tpu.memory_space<vmem>>, vector<16x3xf32>
    %cst = arith.constant 0.000000e+00 : f32
    %7 = vector.shape_cast %5 : vector<16x1xi1> to vector<16x1xi1>
    %8 = vector.broadcast %7 : vector<16x1xi1> to vector<16x3xi1>
    %9 = vector.broadcast %cst : f32 to vector<16x3xf32>
    %10 = arith.select %8, %6, %9 : vector<16x3xi1>, vector<16x3xf32>
    %11 = vector.extract_strided_slice %10 {offsets = [0, 0], sizes = [16, 1], strides = [1, 1]} : vector<16x3xf32> to vector<16x1xf32>
    %c0_1 = arith.constant 0 : index
    %c0_2 = arith.constant 0 : index
    %12 = vector.load %arg2[%c0_1, %c0_2] : memref<3x48xf32, #tpu.memory_space<vmem>>, vector<1x48xf32>
    %13 = vector.broadcast %11 : vector<16x1xf32> to vector<16x48xf32>
    %14 = vector.broadcast %12 : vector<1x48xf32> to vector<16x48xf32>
    %15 = arith.mulf %13, %14 : vector<16x48xf32>
    %16 = vector.extract_strided_slice %10 {offsets = [0, 1], sizes = [16, 1], strides = [1, 1]} : vector<16x3xf32> to vector<16x1xf32>
    %c1 = arith.constant 1 : index
    %c0_3 = arith.constant 0 : index
    %17 = vector.load %arg2[%c1, %c0_3] : memref<3x48xf32, #tpu.memory_space<vmem>>, vector<1x48xf32>
    %18 = vector.broadcast %16 : vector<16x1xf32> to vector<16x48xf32>
    %19 = vector.broadcast %17 : vector<1x48xf32> to vector<16x48xf32>
    %20 = arith.mulf %18, %19 : vector<16x48xf32>
    %21 = arith.addf %15, %20 : vector<16x48xf32>
    %22 = vector.extract_strided_slice %10 {offsets = [0, 2], sizes = [16, 1], strides = [1, 1]} : vector<16x3xf32> to vector<16x1xf32>
    %c2 = arith.constant 2 : index
    %c0_4 = arith.constant 0 : index
    %23 = vector.load %arg2[%c2, %c0_4] : memref<3x48xf32, #tpu.memory_space<vmem>>, vector<1x48xf32>
    %24 = vector.broadcast %22 : vector<16x1xf32> to vector<16x48xf32>
    %25 = vector.broadcast %23 : vector<1x48xf32> to vector<16x48xf32>
    %26 = arith.mulf %24, %25 : vector<16x48xf32>
    %27 = arith.addf %21, %26 : vector<16x48xf32>
    %c0_5 = arith.constant 0 : index
    %c0_6 = arith.constant 0 : index
    %28 = vector.load %arg3[%c0_5, %c0_6] : memref<16x48xf32, #tpu.memory_space<vmem>>, vector<16x48xf32>
    tpu.vector_store %arg3[%c0_5, %c0_6], %27 {strides = array<i32>} : memref<16x48xf32, #tpu.memory_space<vmem>>, vector<16x48xf32>,
    return
  }
  func.func @transform_0(%arg0: i32) -> (i32, i32) {
    %c0_i32 = arith.constant 0 : i32
    %0 = arith.minsi %arg0, %c0_i32 : i32
    %c0_i32_0 = arith.constant 0 : i32
    %c0_i32_1 = arith.constant 0 : i32
    return %0, %c0_i32_0 : i32, i32
  }
  func.func @transform_1(%arg0: i32) -> (i32, i32) {
    %c0_i32 = arith.constant 0 : i32
    %c0_i32_0 = arith.constant 0 : i32
    %c0_i32_1 = arith.constant 0 : i32
    return %c0_i32, %c0_i32_0 : i32, i32
  }
  func.func @transform_2(%arg0: i32) -> (i32, i32) {
    %c0_i32 = arith.constant 0 : i32
    %c0_i32_0 = arith.constant 0 : i32
    return %arg0, %c0_i32 : i32, i32
  }
}

</mosaic_0001>

<bundles_post_ra>
// kernel: tpu_custom_call.1
= control target key start
LH: loop header
LB: loop body
LE: loop exit
PB: predicated region body
PF: predicated region fallthrough
CT: control target
= control target key end

     0   :  { %v135_v1 = vmov 1   ;;  %v136_v2 = vmov 0   ;;  %s172_s0 = inlined_call_operand.vmem [shape: f32[8,3], index: 0, kind: input, shape index: {}]   ;;  %s173_s1 = inlined_call_operand.vmem [shape: f32[3,48], index: 1, kind: input, shape index: {}]   ;;  %s174_s2 = inlined_call_operand.hbm [shape: f32[10,48], index: 2, kind: output, shape index: {}]  }
   0x1   :  { %v21_v0 = vld [vmem:[%s172_s0] sm:$0xff]  ;;  %110 = vset.pattern.permute.xlu1 %v135_v1  ;;  %109 = vset.pattern.permute.xlu0 %v136_v2 }
   0x2   :  { %7 = vsyncpa [#allocation3], 0  ;;  %48 = vperm.xlu1 %110, %v21_v0   ;;  %32 = vperm.xlu0 %109, %v21_v0   ;;  %v137_v3 = vmov 0.0   ;;  %v138_v4 = vmov 2   ;;  %v100_v7 = vld [vmem:[%s173_s1 + $0x1] ss:$0 sm:$0xff] }
   0x3   :  { %v99_v8 = vld [vmem:[%s173_s1] ss:$0 sm:$0xff]  ;;  %v101_v15 = vld [vmem:[%s173_s1 + $0x2] ss:$0 sm:$0xff]  ;;  %s139_s16 = smov [#allocation2]   ;;  %vm80_vm0 = vcmask 392192  }
   0x4   :  { %s88_s17 = sshll.u32 %s139_s16, 4  ;;  %s89_s17 = int_to_ptr.vmem [resolvable:$true] %s88_s17 }
   0x5   :  { %s113_s18 = scalar_lea.vmem %s89_s17, 256  ;;  %p118_p1 = scmp.lt.s32.totalorder %s89_s17, %s89_s17 }
   0x6   :  { %52 = vperm.xlu1 %110, %v137_v3   ;;  %37 = vperm.xlu0 %109, %v137_v3   ;;  %p114_p0 = scmp.ne.s32.totalorder %s89_s17, %s113_s18  ;;  %p119_p2 = scmp.lt.s32.totalorder %s113_s18, %s113_s18 }
   0x8   :  { %p120_p3 = por %p119_p2, %p118_p1 }
   0xa   :  { %112 = vset.pattern.permute.xlu1 %v138_v4  ;;  %111 = vset.pattern.permute.xlu0 %v138_v4  ;;  %p121_p4 = pnand %p120_p3, %p114_p0 }
   0xb   :  { %69 = vperm.xlu1 %112, %v137_v3   ;;  %65 = vperm.xlu0 %111, %v21_v0  }
  0x7d   :  { %v49_v5 = vpop.permute.xlu1 %48  ;;  %v33_v6 = vpop.permute.xlu0 %32 }
  0x7e   :  { %v59_v11 = vmul.f32 %v100_v7, %v49_v5  ;;  %v44_v12 = vmul.f32 %v99_v8, %v33_v6 }
  0x80   :  { %v61_v18 = vadd.f32 %v59_v11, %v44_v12 }
  0x81   :  { %v53_v9 = vpop.permute.xlu1 %52  ;;  %v38_v10 = vpop.permute.xlu0 %37 }
  0x82   :  { %v60_v13 = vmul.f32 %v100_v7, %v53_v9  ;;  %v45_v14 = vmul.f32 %v99_v8, %v38_v10 }
  0x84   :  { %v62_v19 = vadd.f32 %v60_v13, %v45_v14 }
  0x86   :  { %v70_v16 = vpop.permute.xlu1 %69  ;;  %v66_v17 = vpop.permute.xlu0 %65 }
  0x87   :  { %v77_v20 = vmul.f32 %v101_v15, %v70_v16  ;;  %v76_v21 = vmul.f32 %v101_v15, %v66_v17 }
  0x89   :  { %v79_v22 = vadd.f32 %v77_v20, %v62_v19  ;;  %v78_v23 = vadd.f32 %v76_v21, %v61_v18 }
  0x8b   :  { %82 = vst.msk [vmem:[#allocation2 + $0x8] sm:$0xff] %vm80_vm0, %v79_v22  ;;  %81 = vst.msk [vmem:[#allocation2] sm:$0xff] %vm80_vm0, %v78_v23 }
  0x8c   :  { %124 = shalt.err (!%p121_p4)
}
  0x8d   :  { %s140_s1 = smov 128   ;;  %s141_s19 = smov 8  }
  0x8e   :  { %94 = dma.vmem_to_hbm [thread:$0]  %s89_s17, 256, %s174_s2, [#allocation3], %s140_s1, %s140_s1, %s141_s19  }
  0x8f   :  { %133 = dma.done.wait [#allocation3], 256  }
  0x90   :  { %134 = vsyncadd [#allocation3], 4294967040 }
  0x91   :  { %98 = vsyncpa [#allocation3], 1 }

</bundles_post_ra>
